<compile_context>
chip_gen: v6e
topology: v6e:2x2x1
jax: 0.10.0
libtpu: 0.0.40
codegen_flags: <defaults>
</compile_context>

<pallas_src>
import functools

import jax
import jax.numpy as jnp
from jax import lax
from jax.experimental import pallas as pl
from jax.experimental.pallas import tpu as pltpu

_LANES = 128


def _focal_loss_kernel(x_ref, t_ref, o_ref, *, gamma, alpha):
    x = x_ref[...].astype(jnp.float32)
    t = t_ref[...].astype(jnp.float32)

    # Numerically stable BCE-with-logits (PyTorch formulation):
    #   bce = max(x, 0) - x*t + log1p(exp(-|x|))
    m = jnp.maximum(x, 0.0) - x * t
    e = jnp.exp(-jnp.abs(x))
    bce = m + jnp.log1p(e)

    # NOTE: the reference module computes pt = exp(+bce) (not exp(-bce)).
    # Reuse e to avoid a second full exp:  exp(bce) = exp(m) * (1 + e).
    # (Faithful to the reference: overflows to inf for |logit| >~ 88 with a
    # mismatched target, exactly as the PyTorch module does.)
    pt = jnp.exp(m) * (1.0 + e)

    one_minus_pt = 1.0 - pt
    if float(gamma) == int(gamma):
        # Integer exponent -> 1-2 VPU multiplies, and well-defined for the
        # negative base (1 - pt <= 0 here since bce >= 0).
        focal = lax.integer_pow(one_minus_pt, int(gamma))
    else:
        # TODO(synk): non-integer gamma with a negative base is NaN, exactly as
        # in the PyTorch reference; kept as-is for fidelity.
        focal = one_minus_pt ** float(gamma)

    loss = alpha * focal * bce
    o_ref[...] = loss.astype(o_ref.dtype)


def focal_loss(inputs, targets, gamma=2, alpha=0.25, *, tile_rows=8192):
    """Elementwise focal loss for inputs/targets of any (matching) shape."""
    assert inputs.shape == targets.shape
    orig_shape = inputs.shape
    out_dtype = inputs.dtype
    n_total = inputs.size

    x_item = jnp.dtype(inputs.dtype).itemsize
    t_item = jnp.dtype(targets.dtype).itemsize
    o_item = jnp.dtype(out_dtype).itemsize
    # Minimum sublane granularity: 8 for 4-byte, 16 for 2-byte, 32 for 1-byte dtypes.
    min_item = min(x_item, t_item, o_item)
    sublane = max(8, 32 // max(1, min_item))

    # Rows of the lane-dense (rows, 128) slab.
    rows = pl.cdiv(n_total, _LANES)

    # Block rows: a multiple of `sublane`, capped at tile_rows, and clamped so
    # grid_n >= 2 whenever the problem spans more than one minimal block
    # (keeps the software pipeline overlapped and both v7x TensorCores busy).
    half_rows = (rows // 2) // sublane * sublane
    if half_rows >= sublane:
        tr = min(int(tile_rows), half_rows)
    else:
        tr = sublane
    tr = max(sublane, (tr // sublane) * sublane)
    grid_n = pl.cdiv(rows, tr)

    # Pad ONLY to the next multiple of 128 lanes (needed for the 2-D reshape).
    # The final partial block (rows % tr != 0) is handled by Pallas via masked
    # OOB reads/writes — no extra HBM passes for block-ragged shapes.
    padded_total = rows * _LANES
    pad = padded_total - n_total

    x_flat = inputs.reshape(-1)
    t_flat = targets.reshape(-1)
    if pad:
        x_flat = jnp.pad(x_flat, (0, pad))
        t_flat = jnp.pad(t_flat, (0, pad))
    x2 = x_flat.reshape(rows, _LANES)
    t2 = t_flat.reshape(rows, _LANES)

    kernel = functools.partial(_focal_loss_kernel, gamma=gamma, alpha=float(alpha))

    cost = pl.CostEstimate(
        flops=10 * padded_total,
        transcendentals=3 * padded_total,
        bytes_accessed=padded_total * (x_item + t_item + o_item),
    )

    # VMEM budget: 3 arrays x 2 pipeline buffers x block bytes, plus headroom.
    # Kept <= 40 MiB so it fits v7x (64 MiB physical) while raising v5e's
    # 16 MiB scoped default enough for the larger blocks.
    block_bytes = tr * _LANES * (x_item + t_item + o_item)
    vmem_limit = int(min(max(2 * block_bytes + (8 << 20), 16 << 20), 40 << 20))

    out = pl.pallas_call(
        kernel,
        out_shape=jax.ShapeDtypeStruct((rows, _LANES), out_dtype),
        grid_spec=pl.GridSpec(
            grid=(grid_n,),
            in_specs=[
                pl.BlockSpec((tr, _LANES), lambda i: (i, 0)),
                pl.BlockSpec((tr, _LANES), lambda i: (i, 0)),
            ],
            out_specs=pl.BlockSpec((tr, _LANES), lambda i: (i, 0)),
        ),
        compiler_params=pltpu.CompilerParams(
            dimension_semantics=("parallel",),
            vmem_limit_bytes=vmem_limit,
        ),
        cost_estimate=cost,
    )(x2, t2)

    out_flat = out.reshape(-1)
    if pad:
        out_flat = out_flat[:n_total]
    return out_flat.reshape(orig_shape)


def focal_loss_ref(inputs, targets, gamma=2, alpha=0.25):
    """Pure-JAX reference mirroring the PyTorch module."""
    x = inputs.astype(jnp.float32)
    t = targets.astype(jnp.float32)
    bce = jnp.maximum(x, 0.0) - x * t + jnp.log1p(jnp.exp(-jnp.abs(x)))
    pt = jnp.exp(bce)
    return (alpha * (1.0 - pt) ** gamma * bce).astype(inputs.dtype)


if __name__ == "__main__":
    key = jax.random.PRNGKey(0)
    k1, k2, k3, k4, k5, k6 = jax.random.split(key, 6)

    # Small NCHW-shaped example: batch=2, channels=4, spatial=16x16.
    # (2048 elements -> 16 rows, tr=8, grid_n=2: multi-block, no padding.)
    B, C, H, W = 2, 4, 16, 16
    logits = jax.random.normal(k1, (B, C, H, W), dtype=jnp.float32)
    targets = jax.random.bernoulli(k2, p=0.3, shape=(B, C, H, W)).astype(jnp.float32)

    out = focal_loss(logits, targets, gamma=2, alpha=0.25)
    out = jax.block_until_ready(out)
    ref = focal_loss_ref(logits, targets, gamma=2, alpha=0.25)
    assert out.shape == (B, C, H, W)
    assert jnp.allclose(out, ref, atol=1e-5, rtol=1e-5)

    # Ragged shape (not a multiple of 128): exercises lane-padding + partial block.
    shape2 = (3, 5, 7, 11)
    logits2 = jax.random.normal(k3, shape2, dtype=jnp.float32)
    targets2 = jax.random.bernoulli(k4, p=0.3, shape=shape2).astype(jnp.float32)
    out2 = jax.block_until_ready(focal_loss(logits2, targets2))
    ref2 = focal_loss_ref(logits2, targets2)
    assert out2.shape == shape2
    assert jnp.allclose(out2, ref2, atol=1e-5, rtol=1e-5)

    # 128-divisible total but rows not divisible by the block rows:
    # exercises the no-pad + masked partial-final-block path.
    shape3 = (5, 256)
    logits3 = jax.random.normal(k5, shape3, dtype=jnp.float32)
    targets3 = jax.random.bernoulli(k6, p=0.3, shape=shape3).astype(jnp.float32)
    out3 = jax.block_until_ready(focal_loss(logits3, targets3))
    ref3 = focal_loss_ref(logits3, targets3)
    assert out3.shape == shape3
    assert jnp.allclose(out3, ref3, atol=1e-5, rtol=1e-5)

    print("KERNEL_OK")
</pallas_src>

<mosaic_0001>
module attributes {stable_mosaic.version = 11 : i64} {
  func.func @_focal_loss_kernel(%arg0: i32, %arg1: memref<8x128xf32, #tpu.memory_space<vmem>>, %arg2: memref<8x128xf32, #tpu.memory_space<vmem>>, %arg3: memref<8x128xf32, #tpu.memory_space<vmem>>) attributes {dimension_semantics = [#tpu.dimension_semantics<parallel>], iteration_bounds = array<i64: 2>, scalar_prefetch = 0 : i64, scratch_operands = 0 : i64, tpu.core_type = #tpu.core_type<tc>, window_params = [{transform_indices = @transform_0, window_bounds = array<i64: 8, 128>}, {transform_indices = @transform_1, window_bounds = array<i64: 8, 128>}, {transform_indices = @transform_2, window_bounds = array<i64: 8, 128>}]} {
    %c0 = arith.constant 0 : index
    %c0_0 = arith.constant 0 : index
    %0 = vector.load %arg1[%c0, %c0_0] : memref<8x128xf32, #tpu.memory_space<vmem>>, vector<8x128xf32>
    %c0_1 = arith.constant 0 : index
    %c0_2 = arith.constant 0 : index
    %1 = vector.load %arg2[%c0_1, %c0_2] : memref<8x128xf32, #tpu.memory_space<vmem>>, vector<8x128xf32>
    %cst = arith.constant 0.000000e+00 : f32
    %2 = vector.broadcast %cst : f32 to vector<8x128xf32>
    %3 = arith.maximumf %0, %2 : vector<8x128xf32>
    %4 = arith.mulf %0, %1 : vector<8x128xf32>
    %5 = arith.subf %3, %4 : vector<8x128xf32>
    %6 = math.absf %0 : vector<8x128xf32>
    %cst_3 = arith.constant 0.000000e+00 : f32
    %7 = vector.broadcast %cst_3 : f32 to vector<8x128xf32>
    %8 = arith.subf %7, %6 : vector<8x128xf32>
    %9 = math.exp %8 : vector<8x128xf32>
    %10 = math.log1p %9 : vector<8x128xf32>
    %11 = arith.addf %5, %10 : vector<8x128xf32>
    %12 = math.exp %5 : vector<8x128xf32>
    %cst_4 = arith.constant 1.000000e+00 : f32
    %13 = vector.broadcast %cst_4 : f32 to vector<8x128xf32>
    %14 = arith.addf %13, %9 : vector<8x128xf32>
    %15 = arith.mulf %12, %14 : vector<8x128xf32>
    %cst_5 = arith.constant 1.000000e+00 : f32
    %16 = vector.broadcast %cst_5 : f32 to vector<8x128xf32>
    %17 = arith.subf %16, %15 : vector<8x128xf32>
    %18 = arith.mulf %17, %17 : vector<8x128xf32>
    %cst_6 = arith.constant 2.500000e-01 : f32
    %19 = vector.broadcast %cst_6 : f32 to vector<8x128xf32>
    %20 = arith.mulf %19, %18 : vector<8x128xf32>
    %21 = arith.mulf %20, %11 : vector<8x128xf32>
    %c0_7 = arith.constant 0 : index
    %c0_8 = arith.constant 0 : index
    %22 = vector.load %arg3[%c0_7, %c0_8] : memref<8x128xf32, #tpu.memory_space<vmem>>, vector<8x128xf32>
    tpu.vector_store %arg3[%c0_7, %c0_8], %21 {strides = array<i32>} : memref<8x128xf32, #tpu.memory_space<vmem>>, vector<8x128xf32>,
    return
  }
  func.func @transform_0(%arg0: i32) -> (i32, i32) {
    %c0_i32 = arith.constant 0 : i32
    %c0_i32_0 = arith.constant 0 : i32
    return %arg0, %c0_i32 : i32, i32
  }
  func.func @transform_1(%arg0: i32) -> (i32, i32) {
    %c0_i32 = arith.constant 0 : i32
    %c0_i32_0 = arith.constant 0 : i32
    return %arg0, %c0_i32 : i32, i32
  }
  func.func @transform_2(%arg0: i32) -> (i32, i32) {
    %c0_i32 = arith.constant 0 : i32
    %c0_i32_0 = arith.constant 0 : i32
    return %arg0, %c0_i32 : i32, i32
  }
}

</mosaic_0001>

<bundles_post_ra>
// kernel: tpu_custom_call.1
= control target key start
LH: loop header
LB: loop body
LE: loop exit
PB: predicated region body
PF: predicated region fallthrough
CT: control target
= control target key end

     0   :  { %7 = vsyncpa [#allocation3], 0  ;;  %s746_s0 = inlined_call_operand.hbm [shape: f32[16,128], index: 0, kind: input, shape index: {}]   ;;  %s747_s1 = inlined_call_operand.hbm [shape: f32[16,128], index: 1, kind: input, shape index: {}]   ;;  %s748_s2 = inlined_call_operand.hbm [shape: f32[16,128], index: 2, kind: output, shape index: {}]  }
   0x1   :  { %9 = vsyncpa [#allocation3 + $0x1], 0 }
   0x2   :  { %10 = vsyncpa [#allocation6], 0 }
   0x3   :  { %12 = vsyncpa [#allocation6 + $0x1], 0 }
   0x4   :  { %13 = vsyncpa [#allocation4], 0 }
   0x5   :  { %15 = vsyncpa [#allocation4 + $0x1], 0  ;;  %s547_s9 = smov 0   ;;  %s549_s10 = smov 0  }
   0x6   :  { %s551_s11 = smov 0   ;;  %s553_s12 = smov 0  }
   0x7 LB: > { %s568_s13 = sadd.s32 4294967295, %s527_s12   ;;  %s331_s14 = sadd.s32 4294967294, %s527_s12   ;;  %s527_s12 = sphi %s553_s12, %s767_s12   ;;  %s523_s11 = sphi %s551_s11, %s766_s11   ;;  %s519_s10 = sphi %s549_s10, %s765_s10   ;;  %s515_s9 = sphi %s547_s9, %s764_s9  }
   0x8   : > { %s572_s15 = sadd.s32 1, %s527_s12   ;;  %s28_s16 = sadd.s32 1, %s523_s11 }
   0x9   : > { %s25_s17 = ssub.s32 %s527_s12, %s572_s15  ;;  %p35_p0 = scmp.ne.s32.totalorder %s523_s11, %s519_s10 }
   0xa   : > { %p26_p1 = scmp.eq.s32.totalorder %s25_s17, 0  ;;  %p36_p2 = scmp.eq.s32.totalorder %s527_s12, 0 }
   0xb   : > { %p41_p3 = scmp.ne.s32.totalorder %s519_s10, %s515_s9  ;;  %p42_p4 = scmp.eq.s32.totalorder %s568_s13, 0 }
   0xc   : > { %s584_s18 = scalar_select %p26_p1, %s523_s11, %s28_s16  }
   0xd   : > { %p586_p5 = por %p36_p2, %p35_p0  ;;  %p590_p6 = por %p42_p4, %p41_p3 }
   0xe   : > { %p91_p7 = scmp.eq.s32.totalorder %s568_s13, 1  ;;  %p97_p8 = scmp.eq.s32.totalorder %s331_s14, 1 }
   0xf   : > { %s752_s20 = scalar_select %p590_p6, 1, 0 }
  0x10   : > { %p363_p10 = scmp.lt.s32.totalorder %s527_s12, 2  ;;  %p597_p11 = por %p91_p7, %p35_p0 }
  0x11   : > { %p601_p12 = por %p97_p8, %p41_p3  ;;  %s606_s23 = sand.u32 1, %s523_s11  }
  0x12   : > { %s753_s21 = scalar_select %p597_p11, 1, 0 }
  0x13   : > { %s754_s22 = scalar_select %p601_p12, 1, 0 }
  0x14   : > { %s335_s24 = sshll.u32 %s527_s12, 7  ;;  %s334_s25 = sshll.u32 %s606_s23, 3 }
  0x15   : > { %s615_s28 = scalar_lea.hbm %s746_s0, %s335_s24  ;;  %s121_s29 = scalar_lea.vmem [#allocation2], %s334_s25 }
  0x16   : > { %s128_s30 = sshll.u32 %s121_s29, 4  ;;  %p621_p13 = pnand %p363_p10, %p586_p5  ;;  %s625_s30 = int_to_ptr.vmem [resolvable:$true] %s128_s30 }
  0x17   : > { %s118_s4 = scalar_lea.sflag [#allocation3], %s606_s23  ;;  %s403_s5 = scalar_lea.hbm %s615_s28, 128 }
  0x18   : > { %p404_p2 = scmp.ne.s32.totalorder %s615_s28, %s403_s5  ;;  %p405_p3 = pneg %p621_p13 }
  0x19   : > { %s408_s8 = scalar_lea.hbm %s746_s0, 256  ;;  %p409_p5 = scmp.lt.s32.totalorder %s615_s28, %s746_s0 }
  0x1a   : > { %p406_p4 = pnand %p405_p3, %p404_p2  ;;  %p410_p8 = scmp.lt.s32.totalorder %s408_s8, %s403_s5 }
  0x1c   : > { %p407_p7 = pneg %p406_p4  ;;  %p411_p10 = por %p410_p8, %p409_p5 }
  0x1e   : > { %p412_p9 = pnand %p411_p10, %p407_p7 }
  0x20   : > { %415 = shalt.err (!%p412_p9)
}
  0x21   : > { %s416_s17 = scalar_lea.vmem %s625_s30, 128  ;;  %s529_s19 = smov [#allocation2]  }
  0x22   : > { %p417_p0 = scmp.ne.s32.totalorder %s625_s30, %s416_s17  ;;  %s421_s26 = sshll.u32 %s529_s19, 4  ;;  %s422_s26 = int_to_ptr.vmem [resolvable:$false] %s421_s26 }
  0x23   : > { %s423_s27 = scalar_lea.vmem %s422_s26, 256  ;;  %p424_p1 = scmp.lt.s32.totalorder %s625_s30, %s422_s26 }
  0x24   : > { %p419_p2 = pnand %p417_p0, %p405_p3  ;;  %p425_p12 = scmp.lt.s32.totalorder %s423_s27, %s416_s17 }
  0x26   : > { %p420_p4 = pneg %p419_p2  ;;  %p426_p11 = por %p425_p12, %p424_p1 }
  0x28   : > { %p427_p5 = pnand %p426_p11, %p420_p4 }
  0x2a   : > { %430 = shalt.err (!%p427_p5)
}
  0x2b   : > { %355 = dma.hbm_to_vmem [thread:$0]  (!%p621_p13), %s615_s28, 128, %s625_s30, %s118_s4  }
  0x2c   : > { %p756_p9 = scmp.lt.s32.totalorder %s527_s12, 3  ;;  %p757_p0 = scmp.ge.s32.totalorder %s527_s12, 1 }
  0x2d   : > { %s667_s7 = scalar_lea.hbm %s747_s1, %s335_s24  ;;  %s139_s8 = scalar_lea.vmem [#allocation5], %s334_s25 }
  0x2e   : > { %p658_p7 = pnand %p757_p0, %p756_p9  ;;  %s146_s14 = sshll.u32 %s139_s8, 4  ;;  %s147_s14 = int_to_ptr.vmem [resolvable:$true] %s146_s14 }
  0x2f   : > { %s136_s28 = scalar_lea.sflag [#allocation6], %s606_s23  ;;  %s431_s30 = scalar_lea.hbm %s667_s7, 128 }
  0x30   : > { %s758_s29 = scalar_select %p658_p7, 1, 0 }
  0x31   : > { %p432_p11 = scmp.ne.s32.totalorder %s667_s7, %s431_s30  ;;  %s436_s17 = scalar_lea.hbm %s747_s1, 256 }
  0x32   : > { %p437_p8 = scmp.lt.s32.totalorder %s667_s7, %s747_s1  ;;  %p438_p10 = scmp.lt.s32.totalorder %s436_s17, %s431_s30 }
  0x33   : > { %p434_p12 = pnand %p432_p11, %p405_p3 }
  0x34   : > { %p439_p2 = por %p438_p10, %p437_p8 }
  0x35   : > { %p435_p1 = pneg %p434_p12 }
  0x37   : > { %p440_p4 = pnand %p439_p2, %p435_p1 }
  0x39   : > { %443 = shalt.err (!%p440_p4)
}
  0x3a   : > { %s444_s25 = scalar_lea.vmem %s147_s14, 128  ;;  %s530_s23 = smov [#allocation5]  }
  0x3b   : > { %p445_p5 = scmp.ne.s32.totalorder %s147_s14, %s444_s25  ;;  %s449_s26 = sshll.u32 %s530_s23, 4  ;;  %s450_s26 = int_to_ptr.vmem [resolvable:$false] %s449_s26 }
  0x3c   : > { %s451_s27 = scalar_lea.vmem %s450_s26, 256  ;;  %p452_p11 = scmp.lt.s32.totalorder %s147_s14, %s450_s26 }
  0x3d   : > { %p447_p9 = pnand %p445_p5, %p405_p3  ;;  %p453_p12 = scmp.lt.s32.totalorder %s451_s27, %s444_s25 }
  0x3f   : > { %p448_p0 = pneg %p447_p9  ;;  %p454_p6 = por %p453_p12, %p452_p11 }
  0x41   : > { %p455_p7 = pnand %p454_p6, %p448_p0 }
  0x43   : > { %458 = shalt.err (!%p455_p7)
}
  0x44   : > { %358 = dma.hbm_to_vmem [thread:$0]  (!%p621_p13), %s667_s7, 128, %s147_s14, %s136_s28  }
  0x45   : > { %p759_p1 = scmp.ne.s32.totalorder %s758_s29, 0 }
  0x46   : > { %s693_s5 = sand.u32 (!%p759_p1), 1, %s519_s10   ;;  %p760_p6 = scmp.ne.s32.totalorder (!%p759_p1), %s752_s20, 0 }
  0x47   : > { %155 = sbr.rel (%p759_p1) target bundleno = 136 (0x88), region = 28  ;;  %s696_s6 = sshll.u32 (!%p759_p1), %s693_s5, 3 }
  0x48   : > { %s158_s8 = scalar_lea.sflag (!%p759_p1), [#allocation3], %s693_s5  ;;  %s161_s30 = scalar_lea.vmem (!%p759_p1), [#allocation2], %s696_s6 }
  0x4c   : > { %502 = dma.done.wait (%p760_p6), %s158_s8, 128  }
  0x4d   : > { %504 = vsyncadd (%p760_p6), %s158_s8, 4294967168  ;;  %s167_s3 = scalar_lea.sflag [#allocation6], %s693_s5  ;;  %s170_s29 = scalar_lea.vmem [#allocation5], %s696_s6 }
  0x4e   : > { %506 = dma.done.wait (%p760_p6), %s167_s3, 128  }
  0x4f   : > { %508 = vsyncadd (%p760_p6), %s167_s3, 4294967168  ;;  %v196_v0 = vld [vmem:[%s161_s30] sm:$0xff]  ;;  %v197_v1 = vld [vmem:[%s170_s29] sm:$0xff]  ;;  %s195_s20 = scalar_lea.vmem [#allocation7], %s696_s6  ;;  %s343_s14 = sshll.u32 %s568_s13, 7 }
  0x50   : > { %v198_v2 = vmax.f32 %v196_v0, 0.0  ;;  %v199_v3 = vmul.f32 %v197_v1, %v196_v0  ;;  %v201_v4 = vand.u32 2147483647, %v196_v0  ;;  %s238_s7 = sshll.u32 %s195_s20, 4  ;;  %s236_s16 = scalar_lea.hbm %s748_s2, %s343_s14  ;;  %s239_s7 = int_to_ptr.vmem [resolvable:$true] %s238_s7 }
  0x51   : > { %s225_s17 = scalar_lea.sflag [#allocation4], %s693_s5  ;;  %s459_s24 = scalar_lea.vmem %s239_s7, 128 }
  0x52   : > { %v200_v5 = vsub.f32 %v198_v2, %v199_v3  ;;  %v202_v6 = vsub.f32 0.0, %v201_v4  ;;  %p460_p13 = scmp.ne.s32.totalorder %s239_s7, %s459_s24  ;;  %p761_p3 = scmp.ne.s32.totalorder %s753_s21, 0 }
  0x53   : > { %s531_s19 = smov [#allocation7]  }
  0x54   : > { %v203_v7 = vmul.f32 1.442695, %v202_v6  ;;  %v215_v8 = vmul.f32 1.442695, %v200_v5  ;;  %p461_p7 = pnand %p460_p13, %p761_p3  ;;  %s463_s25 = sshll.u32 %s531_s19, 4  ;;  %s464_s25 = int_to_ptr.vmem [resolvable:$false] %s463_s25 }
  0x55   : > { %s465_s23 = scalar_lea.vmem %s464_s25, 256  ;;  %p466_p10 = scmp.lt.s32.totalorder %s239_s7, %s464_s25 }
  0x56   : > { %397 = vpow2.f32 %v203_v7  ;;  %p462_p8 = pneg %p461_p7  ;;  %p467_p2 = scmp.lt.s32.totalorder %s465_s23, %s459_s24 }
  0x57   : > { %399 = vpow2.f32 %v215_v8 }
  0x58   : > { %p468_p4 = por %p467_p2, %p466_p10 }
  0x5a   : > { %p469_p5 = pnand %p468_p4, %p462_p8 }
  0x63   : > { %v398_v9 = vpop.eup %397 }
  0x64   : > { %v205_v10 = vadd.f32 1.0, %v398_v9  ;;  %v400_v11 = vpop.eup %399  ;;  %v208_v13 = vmul.f32 -0.5, %v398_v9  ;;  %v211_v16 = vand.u32 2147483647, %v398_v9 }
  0x66   : > { %401 = vlog2.f32 %v205_v10  ;;  %v218_v12 = vmul.f32 %v400_v11, %v205_v10  ;;  %v209_v15 = vadd.f32 1.0, %v208_v13  ;;  %vm212_vm0 = vcmp.lt.f32.partialorder %v211_v16, 0.0004427343 }
  0x68   : > { %v219_v14 = vsub.f32 1.0, %v218_v12  ;;  %v210_v18 = vmul.f32 %v398_v9, %v209_v15 }
  0x6a   : > { %v220_v17 = vmul.f32 %v219_v14, %v219_v14 }
  0x6c   : > { %v221_v21 = vmul.f32 0.25, %v220_v17 }
  0x73   : > { %v402_v19 = vpop.eup %401 }
  0x74   : > { %v207_v20 = vmul.f32 0.6931472, %v402_v19 }
  0x76   : > { %v213_v22 = vsel %vm212_vm0, %v210_v18, %v207_v20 }
  0x77   : > { %v214_v23 = vadd.f32 %v213_v22, %v200_v5 }
  0x79   : > { %v222_v24 = vmul.f32 %v221_v21, %v214_v23 }
  0x7b   : > { %223 = vst [vmem:[%s195_s20] sm:$0xff] %v222_v24 }
  0x7c   : > { %472 = shalt.err (!%p469_p5)
}
  0x7d   : > { %s473_s13 = scalar_lea.hbm %s236_s16, 128  ;;  %s477_s5 = scalar_lea.hbm %s748_s2, 256 }
  0x7e   : > { %p474_p9 = scmp.ne.s32.totalorder %s236_s16, %s473_s13  ;;  %p478_p12 = scmp.lt.s32.totalorder %s236_s16, %s748_s2 }
  0x7f   : > { %p479_p1 = scmp.lt.s32.totalorder %s477_s5, %s473_s13 }
  0x80   : > { %p475_p0 = pnand %p474_p9, %p761_p3 }
  0x81   : > { %p480_p6 = por %p479_p1, %p478_p12 }
  0x82   : > { %p476_p11 = pneg %p475_p0 }
  0x84   : > { %p481_p13 = pnand %p480_p6, %p476_p11 }
  0x86   : > { %484 = shalt.err (!%p481_p13)
}
  0x87   : > { %350 = dma.vmem_to_hbm [thread:$0]  (%p761_p3), %s239_s7, 128, %s236_s16, %s225_s17  }
  0x88 PF: > { %s250_s30 = sand.u32 1, %s515_s9   ;;  %p762_p7 = scmp.ne.s32.totalorder %s754_s22, 0 }
  0x89   : > { %p763_p8 = scmp.ge.s32.totalorder %s527_s12, 2  ;;  %s251_s3 = scalar_lea.sflag [#allocation4], %s250_s30 }
  0x8b   : > { %p360_p10 = pnand %p763_p8, %p762_p7 }
  0x8d   : > { %p361_p2 = pneg %p360_p10 }
  0x8f   : > { %510 = dma.done.wait (%p361_p2), %s251_s3, 128  }
  0x90   : > { %512 = vsyncadd (%p361_p2), %s251_s3, 4294967168  ;;  %p18_p4 = scmp.ge.s32.totalorder %s572_s15, 4   ;;  %s764_s9 = smov %s519_s10 }
  0x91   : > { %s765_s10 = smov %s523_s11  ;;  %s766_s11 = smov %s584_s18 }
  0x92   : > { %s767_s12 = smov %s572_s15  ;;  %20 = sbr.rel (!%p18_p4) target bundleno = 7 (0x7), region = 86 }
  0x97   :  { %256 = vsyncpa [#allocation3], 1 }
  0x98   :  { %258 = vsyncpa [#allocation3 + $0x1], 1 }
  0x99   :  { %259 = vsyncpa [#allocation6], 1 }
  0x9a   :  { %261 = vsyncpa [#allocation6 + $0x1], 1 }
  0x9b   :  { %262 = vsyncpa [#allocation4], 1 }
  0x9c   :  { %264 = vsyncpa [#allocation4 + $0x1], 1 }

</bundles_post_ra>
